<compile_context>
chip_gen: v6e
topology: v6e:2x2x1
jax: 0.10.0
libtpu: 0.0.40
codegen_flags: <defaults>
</compile_context>

<pallas_src>
import functools

import jax
import jax.numpy as jnp
from jax.experimental import pallas as pl
from jax.experimental.pallas import tpu as pltpu

_LANE = 128


def _round_up(n, m):
    return ((n + m - 1) // m) * m


def _choose_block_k(bc_pad, hw, itemsize):
    # ~8 MiB budget for the double-buffered streamed V chunk pair.
    budget = 8 * 1024 * 1024
    tk = budget // (2 * bc_pad * itemsize)
    tk = max(_LANE, (tk // _LANE) * _LANE)
    return int(min(tk, _round_up(hw, _LANE)))


def _precision_for(dtype):
    # Full-precision MXU path for fp32 inputs so the gram does not drift from a
    # strict fp32 reference; bf16 inputs use the native single-pass MXU path.
    return jax.lax.Precision.HIGHEST if dtype == jnp.float32 else None


# ----------------------------- Pallas kernels ------------------------------


def _gram_kernel(v_ref, g_ref, *, inv_norm, precision):
    """K-tiled gram accumulation: g += V_chunk @ V_chunk.T (no transpose copy)."""
    k = pl.program_id(0)

    @pl.when(k == 0)
    def _init():
        g_ref[...] = jnp.zeros_like(g_ref)

    v = v_ref[...]
    g_ref[...] += jax.lax.dot_general(
        v, v,
        dimension_numbers=(((1,), (1,)), ((), ())),   # contract both last dims
        preferred_element_type=jnp.float32,
        precision=precision,
    )

    @pl.when(k == pl.num_programs(0) - 1)
    def _finalize():
        g_ref[...] *= inv_norm                         # scale once, at the end


def _style_loss_kernel(v_ref, gref_ref, loss_ref, acc_ref,
                       *, inv_norm, inv_nelems, precision):
    """Fused: K-tiled gram of x + MSE against the (resident) reference gram."""
    k = pl.program_id(0)

    @pl.when(k == 0)
    def _init():
        acc_ref[...] = jnp.zeros_like(acc_ref)

    v = v_ref[...]
    acc_ref[...] += jax.lax.dot_general(
        v, v,
        dimension_numbers=(((1,), (1,)), ((), ())),
        preferred_element_type=jnp.float32,
        precision=precision,
    )

    @pl.when(k == pl.num_programs(0) - 1)
    def _finalize():
        diff = acc_ref[...] * inv_norm - gref_ref[...]
        loss_ref[0, 0] = jnp.sum(diff * diff) * inv_nelems


# ------------------------------- wrappers -----------------------------------


def _pad_and_reshape(t, block_k):
    """(B,C,H,W) -> zero-padded (bc_pad, hw_pad) matrix in the original dtype."""
    B, C, H, W = t.shape
    bc, hw = B * C, H * W
    v = t.reshape(bc, hw)                              # no fp32 up-cast here
    bc_pad = _round_up(bc, _LANE)                      # lane-dense / MXU-aligned
    if block_k is None:
        block_k = _choose_block_k(bc_pad, hw, v.dtype.itemsize)
    hw_pad = _round_up(hw, block_k)
    if (bc_pad, hw_pad) != (bc, hw):
        v = jnp.pad(v, ((0, bc_pad - bc), (0, hw_pad - hw)))
    return v, bc, bc_pad, hw_pad, block_k


def _gram_padded(t, block_k=None):
    """Padded (bc_pad, bc_pad) gram matrix (zero in padded rows/cols, exact)."""
    # Note: for B*C > ~2048 the (bc_pad, bc_pad) fp32 accumulator itself would
    # outgrow VMEM and would need an additional gram-row grid axis.
    B, C, H, W = t.shape
    v, bc, bc_pad, hw_pad, block_k = _pad_and_reshape(t, block_k)
    inv_norm = 1.0 / float(B * C * H * W)
    nk = hw_pad // block_k
    gram_pad = pl.pallas_call(
        functools.partial(_gram_kernel, inv_norm=inv_norm,
                          precision=_precision_for(v.dtype)),
        out_shape=jax.ShapeDtypeStruct((bc_pad, bc_pad), jnp.float32),
        grid=(nk,),
        in_specs=[pl.BlockSpec((bc_pad, block_k), lambda k: (0, k))],
        out_specs=pl.BlockSpec((bc_pad, bc_pad), lambda k: (0, 0)),
        compiler_params=pltpu.CompilerParams(
            dimension_semantics=("arbitrary",)),
    )(v)
    return gram_pad, bc


def gram_matrix(t, block_k=None):
    """Pallas equivalent of the PyTorch gram_matrix helper: (B*C, B*C) fp32."""
    gram_pad, bc = _gram_padded(t, block_k)
    return gram_pad[:bc, :bc]


class StyleLoss:
    """JAX/Pallas port of the PyTorch StyleLoss module."""

    def __init__(self, reference, block_k=None):
        # "Detached" by construction: plain jnp arrays, no autograd tape.
        self._block_k = block_k
        gram_pad, bc = _gram_padded(reference, block_k)
        self._gram_reference_padded = gram_pad          # (bc_pad, bc_pad) fp32
        self._bc = bc
        self.gram_reference = gram_pad[:bc, :bc]        # PyTorch-visible field

    def __call__(self, x):
        B, C, H, W = x.shape
        v, bc, bc_pad, hw_pad, block_k = _pad_and_reshape(x, self._block_k)
        if bc != self._bc:
            raise ValueError("B*C of x does not match the reference gram")
        inv_norm = 1.0 / float(B * C * H * W)
        inv_nelems = 1.0 / float(bc * bc)               # mean over the REAL gram
        nk = hw_pad // block_k
        loss = pl.pallas_call(
            functools.partial(
                _style_loss_kernel,
                inv_norm=inv_norm, inv_nelems=inv_nelems,
                precision=_precision_for(v.dtype)),
            out_shape=jax.ShapeDtypeStruct((1, 1), jnp.float32),
            grid=(nk,),
            in_specs=[
                pl.BlockSpec((bc_pad, block_k), lambda k: (0, k)),  # streamed V
                pl.BlockSpec((bc_pad, bc_pad), lambda k: (0, 0)),   # resident ref
            ],
            out_specs=pl.BlockSpec(memory_space=pltpu.MemorySpace.SMEM),
            scratch_shapes=[pltpu.VMEM((bc_pad, bc_pad), jnp.float32)],
            compiler_params=pltpu.CompilerParams(
                dimension_semantics=("arbitrary",)),
        )(v, self._gram_reference_padded)
        self.loss = loss[0, 0]
        return x  # module returns its input unchanged


# --------------------------------- main --------------------------------------

if __name__ == "__main__":
    key = jax.random.PRNGKey(0)
    k_ref, k_x = jax.random.split(key)

    # Small shapes consistent with the module's NCHW conv-activation inputs.
    B, C, H, W = 2, 4, 16, 16
    reference = jax.random.normal(k_ref, (B, C, H, W), dtype=jnp.float32)
    x = jax.random.normal(k_x, (B, C, H, W), dtype=jnp.float32)

    # block_k=128 -> a 2-step K grid on the demo shapes (H*W=256), exercising
    # the accumulate/finalize pipeline; auto-selection would pick one step here.
    module = StyleLoss(reference, block_k=128)
    out = module(x)
    out = jax.block_until_ready(out)
    loss = jax.block_until_ready(module.loss)

    # Plain-JAX reference (same full-precision MXU path as the kernel).
    def _gram_ref(t):
        b, c, h, w = t.shape
        v = t.reshape(b * c, h * w)
        g = jax.lax.dot_general(v, v, (((1,), (1,)), ((), ())),
                                preferred_element_type=jnp.float32,
                                precision=jax.lax.Precision.HIGHEST)
        return g / (b * c * h * w)

    loss_ref = jnp.mean((_gram_ref(x) - _gram_ref(reference)) ** 2)
    gram_x = gram_matrix(x, block_k=128)

    assert out.shape == x.shape
    assert jnp.allclose(out, x)
    assert jnp.allclose(gram_x, _gram_ref(x), rtol=1e-5, atol=1e-6)
    assert jnp.allclose(loss, loss_ref, rtol=1e-4, atol=1e-8), (loss, loss_ref)

    print("KERNEL_OK")
</pallas_src>

<mosaic_0001>
module attributes {stable_mosaic.version = 11 : i64} {
  func.func @_gram_kernel(%arg0: i32, %arg1: memref<128x128xf32, #tpu.memory_space<vmem>>, %arg2: memref<128x128xf32, #tpu.memory_space<vmem>>) attributes {dimension_semantics = [#tpu.dimension_semantics<arbitrary>], iteration_bounds = array<i64: 2>, scalar_prefetch = 0 : i64, scratch_operands = 0 : i64, tpu.core_type = #tpu.core_type<tc>, window_params = [{transform_indices = @transform_0, window_bounds = array<i64: 128, 128>}, {pipeline_mode = #tpu.pipeline_mode<synchronous>, transform_indices = @transform_1, window_bounds = array<i64: 128, 128>}]} {
    %c0_i32 = arith.constant 0 : i32
    %0 = arith.cmpi eq, %arg0, %c0_i32 : i32
    %1 = arith.extui %0 : i1 to i32
    %c0_i32_0 = arith.constant 0 : i32
    %2 = arith.cmpi ne, %1, %c0_i32_0 : i32
    scf.if %2 {
      %cst_7 = arith.constant 0.000000e+00 : f32
      %11 = vector.broadcast %cst_7 : f32 to vector<128x128xf32>
      %c0_8 = arith.constant 0 : index
      %c0_9 = arith.constant 0 : index
      %12 = vector.load %arg2[%c0_8, %c0_9] : memref<128x128xf32, #tpu.memory_space<vmem>>, vector<128x128xf32>
      tpu.vector_store %arg2[%c0_8, %c0_9], %11 {strides = array<i32>} : memref<128x128xf32, #tpu.memory_space<vmem>>, vector<128x128xf32>,
    } else {
    }
    %c0 = arith.constant 0 : index
    %c0_1 = arith.constant 0 : index
    %3 = vector.load %arg1[%c0, %c0_1] : memref<128x128xf32, #tpu.memory_space<vmem>>, vector<128x128xf32>
    %c0_2 = arith.constant 0 : index
    %c0_3 = arith.constant 0 : index
    %4 = vector.load %arg2[%c0_2, %c0_3] : memref<128x128xf32, #tpu.memory_space<vmem>>, vector<128x128xf32>
    %cst = arith.constant dense<0.000000e+00> : vector<128x128xf32>
    %5 = tpu.matmul %3, %3, %cst {dimension_numbers = #tpu.dot_dimension_numbers<[1], [1], [0], [0], [0, 0, 1, 0], [], []>, precision = #tpu.contract_precision<fp32>} : vector<128x128xf32>, vector<128x128xf32>, vector<128x128xf32> -> vector<128x128xf32>
    %6 = arith.addf %4, %5 : vector<128x128xf32>
    %c0_4 = arith.constant 0 : index
    %c0_5 = arith.constant 0 : index
    %7 = vector.load %arg2[%c0_4, %c0_5] : memref<128x128xf32, #tpu.memory_space<vmem>>, vector<128x128xf32>
    tpu.vector_store %arg2[%c0_4, %c0_5], %6 {strides = array<i32>} : memref<128x128xf32, #tpu.memory_space<vmem>>, vector<128x128xf32>,
    %c1_i32 = arith.constant 1 : i32
    %8 = arith.cmpi eq, %arg0, %c1_i32 : i32
    %9 = arith.extui %8 : i1 to i32
    %c0_i32_6 = arith.constant 0 : i32
    %10 = arith.cmpi ne, %9, %c0_i32_6 : i32
    scf.if %10 {
      %c0_7 = arith.constant 0 : index
      %c0_8 = arith.constant 0 : index
      %11 = vector.load %arg2[%c0_7, %c0_8] : memref<128x128xf32, #tpu.memory_space<vmem>>, vector<128x128xf32>
      %cst_9 = arith.constant 4.8828125E-4 : f32
      %12 = vector.broadcast %cst_9 : f32 to vector<128x128xf32>
      %13 = arith.mulf %11, %12 : vector<128x128xf32>
      %c0_10 = arith.constant 0 : index
      %c0_11 = arith.constant 0 : index
      %14 = vector.load %arg2[%c0_10, %c0_11] : memref<128x128xf32, #tpu.memory_space<vmem>>, vector<128x128xf32>
      tpu.vector_store %arg2[%c0_10, %c0_11], %13 {strides = array<i32>} : memref<128x128xf32, #tpu.memory_space<vmem>>, vector<128x128xf32>,
    } else {
    }
    return
  }
  func.func @transform_0(%arg0: i32) -> (i32, i32) {
    %c0_i32 = arith.constant 0 : i32
    %c0_i32_0 = arith.constant 0 : i32
    return %c0_i32, %arg0 : i32, i32
  }
  func.func @transform_1(%arg0: i32) -> (i32, i32) {
    %c0_i32 = arith.constant 0 : i32
    %c0_i32_0 = arith.constant 0 : i32
    %c0_i32_1 = arith.constant 0 : i32
    return %c0_i32, %c0_i32_0 : i32, i32
  }
}

</mosaic_0001>

<bundles_post_ra>
// kernel: tpu_custom_call.1
= control target key start
LH: loop header
LB: loop body
LE: loop exit
PB: predicated region body
PF: predicated region fallthrough
CT: control target
= control target key end

     0   :  { %6 = vsyncpa [#allocation3], 0  ;;  %s3032_s0 = inlined_call_operand.hbm [shape: f32[128,256], index: 0, kind: input, shape index: {}]   ;;  %s3033_s1 = inlined_call_operand.hbm [shape: f32[128,128], index: 1, kind: output, shape index: {}]  }
   0x1   :  { %8 = vsyncpa [#allocation3 + $0x1], 0 }
   0x2   :  { %9 = vsyncpa [#allocation4], 0  ;;  %s2306_s6 = smov 0   ;;  %s2308_s7 = smov 0  }
   0x3   :  { %s2310_s8 = smov 0   ;;  %s2312_s9 = smov 0  }
   0x4 LB: > { %s2325_s10 = sadd.s32 4294967295, %s2286_s9   ;;  %s2328_s11 = sadd.s32 1, %s2286_s9   ;;  %s2286_s9 = sphi %s2312_s9, %s3077_s9   ;;  %s2282_s8 = sphi %s2310_s8, %s3076_s8   ;;  %s2278_s7 = sphi %s2308_s7, %s3075_s7   ;;  %s2274_s6 = sphi %s2306_s6, %s3074_s6  }
   0x5   : > { %s19_s12 = ssub.s32 %s2286_s9, %s2328_s11  ;;  %s22_s13 = sadd.s32 1, %s2282_s8 }
   0x6   : > { %p20_p0 = scmp.eq.s32.totalorder %s19_s12, 0  ;;  %p29_p1 = scmp.ne.s32.totalorder %s2282_s8, %s2278_s7 }
   0x7   : > { %p30_p2 = scmp.eq.s32.totalorder %s2286_s9, 0  ;;  %p35_p3 = scmp.ne.s32.totalorder %s2278_s7, %s2274_s6 }
   0x8   : > { %s2338_s14 = scalar_select %p20_p0, %s2282_s8, %s22_s13  }
   0x9   : > { %p31_p4 = por %p30_p2, %p29_p1  ;;  %p36_p5 = scmp.eq.s32.totalorder %s2325_s10, 0 }
   0xa   : > { %p2154_p6 = scmp.lt.s32.totalorder %s2286_s9, 2  ;;  %s80_s16 = sand.u32 1, %s2282_s8  }
   0xb   : > { %p2342_p7 = por %p36_p5, %p35_p3  ;;  %s1606_s17 = sshll.u32 %s80_s16, 7 }
   0xc   : > { %s1607_s18 = sshll.u32 %s2286_s9, 7  ;;  %s84_s22 = scalar_lea.vmem [#allocation2], %s1606_s17 }
   0xd   : > { %s3039_s15 = scalar_select %p2342_p7, 1, 0 }
   0xe   : > { %s2351_s21 = scalar_lea.hbm %s3032_s0, %s1607_s18  ;;  %s90_s23 = sshll.u32 %s84_s22, 4  ;;  %s2353_s23 = int_to_ptr.vmem [resolvable:$true] %s90_s23 }
   0xf   : > { %p2355_p8 = pnand %p2154_p6, %p31_p4  ;;  %s2359_s25 = scalar_lea.sflag [#allocation3], %s80_s16 }
  0x10   : > { %s2196_s26 = scalar_lea.hbm %s2351_s21, 2048  ;;  %s2201_s29 = scalar_lea.hbm %s3032_s0, 4096 }
  0x11   : > { %p2197_p9 = scmp.ne.s32.totalorder %s2351_s21, %s2196_s26  ;;  %p2198_p10 = pneg %p2355_p8 }
  0x12   : > { %p2202_p13 = scmp.lt.s32.totalorder %s2351_s21, %s3032_s0  ;;  %p2203_p0 = scmp.lt.s32.totalorder %s2201_s29, %s2196_s26 }
  0x13   : > { %p2199_p11 = pnand %p2198_p10, %p2197_p9 }
  0x14   : > { %p2204_p1 = por %p2203_p0, %p2202_p13 }
  0x15   : > { %p2200_p12 = pneg %p2199_p11 }
  0x17   : > { %p2205_p2 = pnand %p2204_p1, %p2200_p12 }
  0x19   : > { %2208 = shalt.err (!%p2205_p2)
}
  0x1a   : > { %s2209_s3 = scalar_lea.vmem %s2353_s23, 2048  ;;  %s2288_s4 = smov [#allocation2]  }
  0x1b   : > { %p2210_p3 = scmp.ne.s32.totalorder %s2353_s23, %s2209_s3  ;;  %s2214_s5 = sshll.u32 %s2288_s4, 4  ;;  %s2215_s5 = int_to_ptr.vmem [resolvable:$false] %s2214_s5 }
  0x1c   : > { %s2216_s6 = scalar_lea.vmem %s2215_s5, 4096  ;;  %p2217_p6 = scmp.lt.s32.totalorder %s2353_s23, %s2215_s5 }
  0x1d   : > { %p2212_p4 = pnand %p2210_p3, %p2198_p10  ;;  %p2218_p9 = scmp.lt.s32.totalorder %s2216_s6, %s2209_s3 }
  0x1f   : > { %p2213_p5 = pneg %p2212_p4  ;;  %p2219_p11 = por %p2218_p9, %p2217_p6 }
  0x21   : > { %p2220_p7 = pnand %p2219_p11, %p2213_p5 }
  0x23   : > { %2223 = shalt.err (!%p2220_p7)
}
  0x24   : > { %s2289_s12 = smov 256   ;;  %s2290_s13 = smov 128  }
  0x25   : > { %s2291_s16 = smov 8   ;;  %p1608_p10 = scmp.ge.s32.totalorder %s2286_s9, 1 }
  0x26   : > { %2153 = dma.hbm_to_vmem [thread:$0]  (!%p2355_p8), %s2351_s21, 2048, %s2353_s23, %s2359_s25, %s2289_s12, %s2290_s13, %s2291_s16  }
  0x27   : > { %p98_p12 = scmp.lt.s32.totalorder %s2286_s9, 3 }
  0x29   : > { %p99_p13 = pnand %p1608_p10, %p98_p12 }
  0x2b   : > { %102 = sbr.rel (%p99_p13) target bundleno = 526 (0x20e), region = 24 }
  0x30   : > { %s104_s17 = sand.u32 1, %s2278_s7   ;;  %p3041_p7 = scmp.ne.s32.totalorder %s3039_s15, 0 }
  0x31   : > { %s1609_s18 = sshll.u32 %s104_s17, 7  ;;  %s105_s19 = scalar_lea.sflag [#allocation3], %s104_s17 }
  0x32   : > { %s2383_s20 = scalar_lea.vmem [#allocation2], %s1609_s18 }
  0x33   : > { %2265 = dma.done.wait (%p3041_p7), %s105_s19, 2048  }
  0x34   : > { %2267 = vsyncadd (%p3041_p7), %s105_s19, 4294965248  ;;  %p1610_p0 = scmp.ne.s32.totalorder %s2325_s10, 0 }
  0x36   : > { %125 = sbr.rel (%p1610_p0) target bundleno = 68 (0x44), region = 32 }
  0x3b   : > { %v2292_v0 = vmov 0.0  }
  0x3c   : > { %126 = vst [vmem:[#allocation5] sm:$0xff] %v2292_v0  ;;  %127 = vst [vmem:[#allocation5 + $0x8] sm:$0xff] %v2292_v0 }
  0x3d   : > { %128 = vst [vmem:[#allocation5 + $0x10] sm:$0xff] %v2292_v0  ;;  %129 = vst [vmem:[#allocation5 + $0x18] sm:$0xff] %v2292_v0 }
  0x3e   : > { %130 = vst [vmem:[#allocation5 + $0x20] sm:$0xff] %v2292_v0  ;;  %131 = vst [vmem:[#allocation5 + $0x28] sm:$0xff] %v2292_v0 }
  0x3f   : > { %132 = vst [vmem:[#allocation5 + $0x30] sm:$0xff] %v2292_v0  ;;  %133 = vst [vmem:[#allocation5 + $0x38] sm:$0xff] %v2292_v0 }
  0x40   : > { %134 = vst [vmem:[#allocation5 + $0x40] sm:$0xff] %v2292_v0  ;;  %135 = vst [vmem:[#allocation5 + $0x48] sm:$0xff] %v2292_v0 }
  0x41   : > { %136 = vst [vmem:[#allocation5 + $0x50] sm:$0xff] %v2292_v0  ;;  %137 = vst [vmem:[#allocation5 + $0x58] sm:$0xff] %v2292_v0 }
  0x42   : > { %138 = vst [vmem:[#allocation5 + $0x60] sm:$0xff] %v2292_v0  ;;  %139 = vst [vmem:[#allocation5 + $0x68] sm:$0xff] %v2292_v0 }
  0x43   : > { %140 = vst [vmem:[#allocation5 + $0x70] sm:$0xff] %v2292_v0  ;;  %141 = vst [vmem:[#allocation5 + $0x78] sm:$0xff] %v2292_v0 }
  0x44 PF: > { %v157_v1 = vld [vmem:[%s2383_s20 + $0x78] sm:$0xff]  ;;  %v156_v2 = vld [vmem:[%s2383_s20 + $0x70] sm:$0xff]  ;;  %v155_v3 = vld [vmem:[%s2383_s20 + $0x68] sm:$0xff]  ;;  %p1611_p8 = scmp.ne.s32.totalorder %s2325_s10, 1 }
  0x45   : > { %v2393_v4 = vand.u32 4294901760, %v157_v1  ;;  %v2395_v5 = vand.u32 4294901760, %v156_v2  ;;  %v2397_v6 = vand.u32 4294901760, %v155_v3  ;;  %v154_v7 = vld [vmem:[%s2383_s20 + $0x60] sm:$0xff]  ;;  %v153_v8 = vld [vmem:[%s2383_s20 + $0x58] sm:$0xff]  ;;  %v152_v17 = vld [vmem:[%s2383_s20 + $0x50] sm:$0xff] }
  0x46   : > { %v2401_v9 = vand.u32 4294901760, %v154_v7  ;;  %v2414_v13 = vand.u32 4294901760, %v153_v8  ;;  %v2435_v21 = vand.u32 4294901760, %v152_v17  ;;  %v151_v27 = vld [vmem:[%s2383_s20 + $0x48] sm:$0xff]  ;;  %v142_v28 = vld [vmem:[%s2383_s20] sm:$0xff]  ;;  %v149_v41 = vld [vmem:[%s2383_s20 + $0x38] sm:$0xff] }
  0x47   : > { %1808 = vmatprep.subr.mxu0 %v2393_v4  ;;  %v2405_v10 = vsub.f32 %v157_v1, %v2393_v4  ;;  %v2408_v11 = vsub.f32 %v156_v2, %v2395_v5  ;;  %v2411_v12 = vsub.f32 %v155_v3, %v2397_v6  ;;  %v2455_v29 = vand.u32 4294901760, %v151_v27  ;;  %v150_v33 = vld [vmem:[%s2383_s20 + $0x40] sm:$0xff]  ;;  %v148_v49 = vld [vmem:[%s2383_s20 + $0x30] sm:$0xff]  ;;  %v147_v56 = vld [vmem:[%s2383_s20 + $0x28] sm:$0xff] }
  0x48   : > { %1809 = vmatpush3.xpose.msra.mxu0 %v2393_v4  ;;  %v2428_v18 = vsub.f32 %v154_v7, %v2401_v9  ;;  %v2438_v22 = vsub.f32 %v153_v8, %v2414_v13  ;;  %v2468_v34 = vsub.f32 %v152_v17, %v2435_v21  ;;  %v2470_v35 = vand.u32 4294901760, %v142_v28  ;;  %v146_v62 = vld [vmem:[%s2383_s20 + $0x20] sm:$0xff]  ;;  %v145_v7 = vld [vmem:[%s2383_s20 + $0x18] sm:$0xff] }
  0x49   : > { %1810 = vmatprep.subr.mxu0 %v2395_v5  ;;  %v2418_v14 = vand.u32 4294901760, %v2405_v10  ;;  %v2421_v15 = vand.u32 4294901760, %v2408_v11  ;;  %v2424_v16 = vand.u32 4294901760, %v2411_v12  ;;  %v2474_v36 = vand.u32 4294901760, %v150_v33 }
  0x4a   : > { %v2448_v26 = vand.u32 4294901760, %v2428_v18  ;;  %v2464_v32 = vand.u32 4294901760, %v2438_v22  ;;  %v2477_v37 = vsub.f32 %v142_v28, %v2470_v35  ;;  %v2486_v40 = vand.u32 4294901760, %v2468_v34  ;;  %1896 = vmatprep.mubr.f32.mxu1 %v2470_v35 }
  0x4b   : > { %v408_v19 = vsub.f32 %v2405_v10, %v2418_v14  ;;  %v398_v20 = vsub.f32 %v2408_v11, %v2421_v15  ;;  %v388_v25 = vsub.f32 %v2411_v12, %v2424_v16  ;;  %v2490_v42 = vsub.f32 %v151_v27, %v2455_v29  ;;  %v144_v27 = vld [vmem:[%s2383_s20 + $0x10] sm:$0xff] }
  0x4c   : > { %1811 = vmatpush3.xpose.msra.mxu0 %v2395_v5  ;;  %v378_v31 = vsub.f32 %v2428_v18, %v2448_v26  ;;  %v368_v39 = vsub.f32 %v2438_v22, %v2464_v32  ;;  %v2493_v43 = vand.u32 4294901760, %v2477_v37  ;;  %v2498_v44 = vand.u32 4294901760, %v149_v41 }
  0x4d   : > { %1812 = vmatprep.subr.mxu0 %v2397_v6  ;;  %v2441_v23 = vand.u32 4294901760, %v408_v19  ;;  %v2443_v24 = vand.u32 4294901760, %v398_v20  ;;  %v2459_v30 = vand.u32 4294901760, %v388_v25  ;;  %v358_v47 = vsub.f32 %v2468_v34, %v2486_v40 }
  0x4e   : > { %v2481_v38 = vand.u32 4294901760, %v378_v31  ;;  %v258_v45 = vsub.f32 %v2477_v37, %v2493_v43  ;;  %v2504_v46 = vand.u32 4294901760, %v368_v39  ;;  %v2509_v48 = vand.u32 4294901760, %v2490_v42 }
  0x4f   : > { %1864 = vmatprep.subr.mxu1 %v2441_v23  ;;  %v2513_v50 = vsub.f32 %v150_v33, %v2474_v36  ;;  %v2519_v52 = vand.u32 4294901760, %v148_v49  ;;  %v2523_v53 = vand.u32 4294901760, %v358_v47  ;;  %v2532_v57 = vsub.f32 %v149_v41, %v2498_v44 }
  0x50   : > { %1813 = vmatpush3.xpose.msra.mxu0 %v2397_v6  ;;  %1865 = vmatpush3.xpose.msra.mxu1 %v2441_v23  ;;  %3042 = vst [vmem:[#allocation8_spill] sm:$0xff] %v2509_v48  ;;  %v2515_v51 = vand.u32 4294901760, %v258_v45  ;;  %v348_v54 = vsub.f32 %v2490_v42, %v2509_v48  ;;  %v2537_v58 = vand.u32 4294901760, %v147_v56  ;;  %v2554_v0 = vand.u32 4294901760, %v146_v62  ;;  %v143_v45 = vld [vmem:[%s2383_s20 + $0x8] sm:$0xff] }
  0x51   : > { %1814 = vmatprep.subr.mxu0 %v2401_v9  ;;  %1866 = vmatprep.subr.mxu1 %v2443_v24  ;;  %v2528_v55 = vand.u32 4294901760, %v2513_v50  ;;  %v2546_v61 = vand.u32 4294901760, %v2532_v57  ;;  %v2550_v63 = vsub.f32 %v148_v49, %v2519_v52  ;;  %v2571_v17 = vand.u32 4294901760, %v145_v7 }
  0x52   : > { %1840 = vmatprep.mubr.f32.mxu0 %v2515_v51  ;;  %v2541_v59 = vand.u32 4294901760, %v348_v54  ;;  %v2567_v8 = vsub.f32 %v147_v56, %v2537_v58  ;;  %v2584_v28 = vsub.f32 %v146_v62, %v2554_v0  ;;  %v2588_v31 = vand.u32 4294901760, %v144_v27 }
  0x53   : > { %3043 = vst [vmem:[#allocation9_spill] sm:$0xff] %v2528_v55  ;;  %v338_v60 = vsub.f32 %v2513_v50, %v2528_v55  ;;  %v328_v2 = vsub.f32 %v2532_v57, %v2546_v61  ;;  %v2563_v3 = vand.u32 4294901760, %v2550_v63  ;;  %v2599_v47 = vsub.f32 %v145_v7, %v2571_v17 }
  0x54   : > { %1815 = vmatpush3.xpose.msra.mxu0 %v2401_v9  ;;  %1867 = vmatpush3.xpose.msra.mxu1 %v2443_v24  ;;  %v2580_v25 = vand.u32 4294901760, %v2567_v8  ;;  %v2595_v41 = vand.u32 4294901760, %v2584_v28  ;;  %v2603_v49 = vand.u32 4294901760, %v143_v45  ;;  %v2612_v62 = vsub.f32 %v144_v27, %v2588_v31 }
  0x55   : > { %1816 = vmatprep.subr.mxu0 %v2414_v13  ;;  %1868 = vmatprep.subr.mxu1 %v2459_v30  ;;  %v2558_v1 = vand.u32 4294901760, %v338_v60  ;;  %v2575_v19 = vand.u32 4294901760, %v328_v2  ;;  %v318_v20 = vsub.f32 %v2550_v63, %v2563_v3  ;;  %v2609_v60 = vand.u32 4294901760, %v2599_v47 }
  0x56   : > { %v308_v39 = vsub.f32 %v2567_v8, %v2580_v25  ;;  %v298_v56 = vsub.f32 %v2584_v28, %v2595_v41 }
  0x57   : > { %v319_v33 = vand.u32 4294901760, %v318_v20  ;;  %v288_v7 = vsub.f32 %v2599_v47, %v2609_v60  ;;  %v2619_v20 = vand.u32 4294901760, %v2612_v62 }
  0x58   : > { %1817 = vmatpush3.xpose.msra.mxu0 %v2414_v13  ;;  %1869 = vmatpush3.xpose.msra.mxu1 %v2459_v30  ;;  %v309_v54 = vand.u32 4294901760, %v308_v39  ;;  %v299_v2 = vand.u32 4294901760, %v298_v56  ;;  %v2622_v39 = vsub.f32 %v143_v45, %v2603_v49 }
  0x59   : > { %1818 = vmatprep.subr.mxu0 %v2435_v21  ;;  %1870 = vmatprep.subr.mxu1 %v2481_v38  ;;  %v289_v27 = vand.u32 4294901760, %v288_v7  ;;  %v278_v48 = vsub.f32 %v2612_v62, %v2619_v20 }
  0x5a   : > { %v2629_v56 = vand.u32 4294901760, %v2622_v39 }
  0x5b   : > { %v279_v45 = vand.u32 4294901760, %v278_v48 }
  0x5c   : > { %1819 = vmatpush3.xpose.msra.mxu0 %v2435_v21  ;;  %1871 = vmatpush3.xpose.msra.mxu1 %v2481_v38  ;;  %v268_v55 = vsub.f32 %v2622_v39, %v2629_v56 }
  0x5d   : > { %1820 = vmatprep.subr.mxu0 %v2455_v29  ;;  %1872 = vmatprep.subr.mxu1 %v2504_v46 }
  0x5e   : > { %v269_v7 = vand.u32 4294901760, %v268_v55 }
  0x60   : > { %1821 = vmatpush3.xpose.msra.mxu0 %v2455_v29  ;;  %1873 = vmatpush3.xpose.msra.mxu1 %v2504_v46 }
  0x61   : > { %1822 = vmatprep.subr.mxu0 %v2474_v36  ;;  %1874 = vmatprep.subr.mxu1 %v2523_v53 }
  0x64   : > { %1823 = vmatpush3.xpose.msra.mxu0 %v2474_v36  ;;  %1875 = vmatpush3.xpose.msra.mxu1 %v2523_v53 }
  0x65   : > { %1824 = vmatprep.subr.mxu0 %v2498_v44  ;;  %1876 = vmatprep.subr.mxu1 %v2541_v59 }
  0x68   : > { %1825 = vmatpush3.xpose.msra.mxu0 %v2498_v44  ;;  %1877 = vmatpush3.xpose.msra.mxu1 %v2541_v59 }
  0x69   : > { %1826 = vmatprep.subr.mxu0 %v2519_v52  ;;  %1878 = vmatprep.subr.mxu1 %v2558_v1 }
  0x6c   : > { %1827 = vmatpush3.xpose.msra.mxu0 %v2519_v52  ;;  %1879 = vmatpush3.xpose.msra.mxu1 %v2558_v1 }
  0x6d   : > { %1828 = vmatprep.subr.mxu0 %v2537_v58  ;;  %1880 = vmatprep.subr.mxu1 %v2575_v19 }
  0x70   : > { %1829 = vmatpush3.xpose.msra.mxu0 %v2537_v58  ;;  %1881 = vmatpush3.xpose.msra.mxu1 %v2575_v19 }
  0x71   : > { %1830 = vmatprep.subr.mxu0 %v2554_v0  ;;  %1882 = vmatprep.subr.mxu1 %v319_v33 }
  0x74   : > { %1831 = vmatpush3.xpose.msra.mxu0 %v2554_v0  ;;  %1883 = vmatpush3.xpose.msra.mxu1 %v319_v33 }
  0x75   : > { %1832 = vmatprep.subr.mxu0 %v2571_v17  ;;  %1884 = vmatprep.subr.mxu1 %v309_v54 }
  0x78   : > { %1833 = vmatpush3.xpose.msra.mxu0 %v2571_v17  ;;  %1885 = vmatpush3.xpose.msra.mxu1 %v309_v54 }
  0x79   : > { %1834 = vmatprep.subr.mxu0 %v2588_v31  ;;  %1886 = vmatprep.subr.mxu1 %v299_v2 }
  0x7c   : > { %1835 = vmatpush3.xpose.msra.mxu0 %v2588_v31  ;;  %1887 = vmatpush3.xpose.msra.mxu1 %v299_v2 }
  0x7d   : > { %1836 = vmatprep.subr.mxu0 %v2603_v49  ;;  %1888 = vmatprep.subr.mxu1 %v289_v27 }
  0x80   : > { %1837 = vmatpush3.xpose.msra.mxu0 %v2603_v49  ;;  %1889 = vmatpush3.xpose.msra.mxu1 %v289_v27 }
  0x81   : > { %1838 = vmatprep.subr.mxu0 %v2470_v35  ;;  %1890 = vmatprep.subr.mxu1 %v279_v45 }
  0x84   : > { %1839 = vmatpush3.xpose.msra.mxu0 %v2470_v35  ;;  %1891 = vmatpush3.xpose.msra.mxu1 %v279_v45 }
  0x85   : > { %1892 = vmatprep.subr.mxu1 %v269_v7  ;;  %1920 = vmatprep.subr.mxu0 %v2405_v10 }
  0x87   : > { %1841 = vmatmul.mubr.f32.vlgmr.msra.gmra.mxu0 %v269_v7 }
  0x88   : > { %1893 = vmatpush3.xpose.msra.mxu1 %v269_v7  ;;  %1921 = vmatpush3.xpose.msra.mxu0 %v2405_v10 }
  0x89   : > { %1894 = vmatprep.subr.mxu1 %v2515_v51  ;;  %1922 = vmatprep.subr.mxu0 %v2408_v11 }
  0x8a   : > { %1843 = vmatprep.mubr.f32.mxu0 %v279_v45 }
  0x8b   : > { %1844 = vmatmul.mubr.f32.gmra.mxu0 %v289_v27 }
  0x8c   : > { %1895 = vmatpush3.xpose.msra.mxu1 %v2515_v51  ;;  %1923 = vmatpush3.xpose.msra.mxu0 %v2408_v11 }
  0x8d   : > { %1924 = vmatprep.subr.mxu0 %v2411_v12  ;;  %1976 = vmatprep.subr.mxu1 %v2393_v4 }
  0x8e   : > { %1846 = vmatprep.mubr.f32.mxu0 %v299_v2 }
  0x8f   : > { %1897 = vmatmul.mubr.f32.vlgmr.msra.gmra.mxu1 %v2603_v49  ;;  %1847 = vmatmul.mubr.f32.gmra.mxu0 %v309_v54 }
  0x90   : > { %1925 = vmatpush3.xpose.msra.mxu0 %v2411_v12  ;;  %1977 = vmatpush3.xpose.msra.mxu1 %v2393_v4 }
  0x91   : > { %1926 = vmatprep.subr.mxu0 %v2428_v18  ;;  %1978 = vmatprep.subr.mxu1 %v2395_v5 }
  0x92   : > { %1899 = vmatprep.mubr.f32.mxu1 %v2588_v31  ;;  %1849 = vmatprep.mubr.f32.mxu0 %v319_v33 }
  0x93   : > { %1900 = vmatmul.mubr.f32.gmra.mxu1 %v2571_v17  ;;  %1850 = vmatmul.mubr.f32.gmra.mxu0 %v2575_v19 }
  0x94   : > { %1927 = vmatpush3.xpose.msra.mxu0 %v2428_v18  ;;  %1979 = vmatpush3.xpose.msra.mxu1 %v2395_v5 }
  0x95   : > { %1928 = vmatprep.subr.mxu0 %v2438_v22  ;;  %1980 = vmatprep.subr.mxu1 %v2397_v6 }
  0x96   : > { %1902 = vmatprep.mubr.f32.mxu1 %v2554_v0  ;;  %1852 = vmatprep.mubr.f32.mxu0 %v2558_v1 }
  0x97   : > { %1903 = vmatmul.mubr.f32.gmra.mxu1 %v2537_v58  ;;  %1853 = vmatmul.mubr.f32.gmra.mxu0 %v2541_v59 }
  0x98   : > { %1929 = vmatpush3.xpose.msra.mxu0 %v2438_v22  ;;  %1981 = vmatpush3.xpose.msra.mxu1 %v2397_v6 }
  0x99   : > { %1930 = vmatprep.subr.mxu0 %v2468_v34  ;;  %1982 = vmatprep.subr.mxu1 %v2401_v9 }
  0x9a   : > { %1905 = vmatprep.mubr.f32.mxu1 %v2519_v52  ;;  %1855 = vmatprep.mubr.f32.mxu0 %v2523_v53 }
  0x9b   : > { %1906 = vmatmul.mubr.f32.gmra.mxu1 %v2498_v44  ;;  %1856 = vmatmul.mubr.f32.gmra.mxu0 %v2504_v46 }
  0x9c   : > { %1931 = vmatpush3.xpose.msra.mxu0 %v2468_v34  ;;  %1983 = vmatpush3.xpose.msra.mxu1 %v2401_v9 }
  0x9d   : > { %1932 = vmatprep.subr.mxu0 %v2490_v42  ;;  %1984 = vmatprep.subr.mxu1 %v2414_v13 }
  0x9e   : > { %1908 = vmatprep.mubr.f32.mxu1 %v2474_v36  ;;  %1858 = vmatprep.mubr.f32.mxu0 %v2481_v38 }
  0x9f   : > { %1909 = vmatmul.mubr.f32.gmra.mxu1 %v2455_v29  ;;  %1859 = vmatmul.mubr.f32.gmra.mxu0 %v2459_v30 }
  0xa0   : > { %1933 = vmatpush3.xpose.msra.mxu0 %v2490_v42  ;;  %1985 = vmatpush3.xpose.msra.mxu1 %v2414_v13 }
  0xa1   : > { %1934 = vmatprep.subr.mxu0 %v2513_v50  ;;  %1986 = vmatprep.subr.mxu1 %v2435_v21 }
  0xa2   : > { %1911 = vmatprep.mubr.f32.mxu1 %v2435_v21  ;;  %1861 = vmatprep.mubr.f32.mxu0 %v2443_v24  ;;  %v3045_v24 = vld [vmem:[#allocation8_spill] sm:$0xff] }
  0xa3   : > { %1912 = vmatmul.mubr.f32.gmra.mxu1 %v2414_v13  ;;  %1862 = vmatmul.mubr.f32.gmra.mxu0 %v2441_v23  ;;  %v3044_v23 = vld [vmem:[#allocation9_spill] sm:$0xff] }
  0xa4   : > { %1935 = vmatpush3.xpose.msra.mxu0 %v2513_v50  ;;  %1987 = vmatpush3.xpose.msra.mxu1 %v2435_v21 }
  0xa5   : > { %1936 = vmatprep.subr.mxu0 %v2532_v57  ;;  %1988 = vmatprep.subr.mxu1 %v2455_v29 }
  0xa6   : > { %1914 = vmatprep.mubr.f32.mxu1 %v2401_v9  ;;  %1952 = vmatprep.mubr.f32.mxu0 %v2477_v37 }
  0xa7   : > { %1915 = vmatmul.mubr.f32.gmra.mxu1 %v2397_v6 }
  0xa8   : > { %1937 = vmatpush3.xpose.msra.mxu0 %v2532_v57  ;;  %1989 = vmatpush3.xpose.msra.mxu1 %v2455_v29 }
  0xa9   : > { %1938 = vmatprep.subr.mxu0 %v2550_v63  ;;  %1990 = vmatprep.subr.mxu1 %v2474_v36 }
  0xaa   : > { %1917 = vmatprep.mubr.f32.mxu1 %v2395_v5 }
  0xab   : > { %1918 = vmatmul.mubr.f32.gmra.mxu1 %v2393_v4 }
  0xac   : > { %1939 = vmatpush3.xpose.msra.mxu0 %v2550_v63  ;;  %1991 = vmatpush3.xpose.msra.mxu1 %v2474_v36 }
  0xad   : > { %1940 = vmatprep.subr.mxu0 %v2567_v8  ;;  %1992 = vmatprep.subr.mxu1 %v2498_v44 }
  0xae   : > { %2008 = vmatprep.mubr.f32.mxu1 %v2493_v43 }
  0xb0   : > { %1941 = vmatpush3.xpose.msra.mxu0 %v2567_v8  ;;  %1993 = vmatpush3.xpose.msra.mxu1 %v2498_v44 }
  0xb1   : > { %1942 = vmatprep.subr.mxu0 %v2584_v28  ;;  %1994 = vmatprep.subr.mxu1 %v2519_v52 }
  0xb4   : > { %1943 = vmatpush3.xpose.msra.mxu0 %v2584_v28  ;;  %1995 = vmatpush3.xpose.msra.mxu1 %v2519_v52 }
  0xb5   : > { %1944 = vmatprep.subr.mxu0 %v2599_v47  ;;  %1996 = vmatprep.subr.mxu1 %v2537_v58 }
  0xb8   : > { %1945 = vmatpush3.xpose.msra.mxu0 %v2599_v47  ;;  %1997 = vmatpush3.xpose.msra.mxu1 %v2537_v58 }
  0xb9   : > { %1946 = vmatprep.subr.mxu0 %v2612_v62  ;;  %1998 = vmatprep.subr.mxu1 %v2554_v0 }
  0xbc   : > { %1947 = vmatpush3.xpose.msra.mxu0 %v2612_v62  ;;  %1999 = vmatpush3.xpose.msra.mxu1 %v2554_v0 }
  0xbd   : > { %1948 = vmatprep.subr.mxu0 %v2622_v39  ;;  %2000 = vmatprep.subr.mxu1 %v2571_v17 }
  0xc0   : > { %1949 = vmatpush3.xpose.msra.mxu0 %v2622_v39  ;;  %2001 = vmatpush3.xpose.msra.mxu1 %v2571_v17 }
  0xc1   : > { %1950 = vmatprep.subr.mxu0 %v2477_v37  ;;  %2002 = vmatprep.subr.mxu1 %v2588_v31 }
  0xc4   : > { %1951 = vmatpush3.xpose.msra.mxu0 %v2477_v37  ;;  %2003 = vmatpush3.xpose.msra.mxu1 %v2588_v31 }
  0xc5   : > { %2004 = vmatprep.subr.mxu1 %v2603_v49  ;;  %2032 = vmatprep.subr.mxu0 %v2418_v14 }
  0xc7   : > { %1953 = vmatmul.mubr.f32.vlgmr.msra.gmra.mxu0 %v2622_v39 }
  0xc8   : > { %2005 = vmatpush3.xpose.msra.mxu1 %v2603_v49  ;;  %2033 = vmatpush3.xpose.msra.mxu0 %v2418_v14 }
  0xc9   : > { %1955 = vmatprep.mubr.f32.mxu0 %v2612_v62  ;;  %2006 = vmatprep.subr.mxu1 %v2470_v35 }
  0xca   : > { %2034 = vmatprep.subr.mxu0 %v2421_v15 }
  0xcb   : > { %1956 = vmatmul.mubr.f32.gmra.mxu0 %v2599_v47 }
  0xcc   : > { %2007 = vmatpush3.xpose.msra.mxu1 %v2470_v35  ;;  %2035 = vmatpush3.xpose.msra.mxu0 %v2421_v15 }
  0xcd   : > { %1958 = vmatprep.mubr.f32.mxu0 %v2584_v28  ;;  %2036 = vmatprep.subr.mxu0 %v2424_v16 }
  0xce   : > { %2088 = vmatprep.subr.mxu1 %v2393_v4 }
  0xcf   : > { %1959 = vmatmul.mubr.f32.gmra.mxu0 %v2567_v8  ;;  %2009 = vmatmul.mubr.f32.vlgmr.msra.gmra.mxu1 %v2629_v56 }
  0xd0   : > { %2037 = vmatpush3.xpose.msra.mxu0 %v2424_v16  ;;  %2089 = vmatpush3.xpose.msra.mxu1 %v2393_v4 }
  0xd1   : > { %1961 = vmatprep.mubr.f32.mxu0 %v2550_v63  ;;  %2011 = vmatprep.mubr.f32.mxu1 %v2619_v20 }
  0xd2   : > { %2038 = vmatprep.subr.mxu0 %v2448_v26  ;;  %2090 = vmatprep.subr.mxu1 %v2395_v5 }
  0xd3   : > { %1962 = vmatmul.mubr.f32.gmra.mxu0 %v2532_v57  ;;  %2012 = vmatmul.mubr.f32.gmra.mxu1 %v2609_v60 }
  0xd4   : > { %2039 = vmatpush3.xpose.msra.mxu0 %v2448_v26  ;;  %2091 = vmatpush3.xpose.msra.mxu1 %v2395_v5 }
  0xd5   : > { %1964 = vmatprep.mubr.f32.mxu0 %v2513_v50  ;;  %2014 = vmatprep.mubr.f32.mxu1 %v2595_v41 }
  0xd6   : > { %2040 = vmatprep.subr.mxu0 %v2464_v32  ;;  %2092 = vmatprep.subr.mxu1 %v2397_v6 }
  0xd7   : > { %1965 = vmatmul.mubr.f32.gmra.mxu0 %v2490_v42  ;;  %2015 = vmatmul.mubr.f32.gmra.mxu1 %v2580_v25 }
  0xd8   : > { %2041 = vmatpush3.xpose.msra.mxu0 %v2464_v32  ;;  %2093 = vmatpush3.xpose.msra.mxu1 %v2397_v6 }
  0xd9   : > { %1967 = vmatprep.mubr.f32.mxu0 %v2468_v34  ;;  %2017 = vmatprep.mubr.f32.mxu1 %v2563_v3 }
  0xda   : > { %2042 = vmatprep.subr.mxu0 %v2486_v40  ;;  %2094 = vmatprep.subr.mxu1 %v2401_v9 }
  0xdb   : > { %1968 = vmatmul.mubr.f32.gmra.mxu0 %v2438_v22  ;;  %2018 = vmatmul.mubr.f32.gmra.mxu1 %v2546_v61 }
  0xdc   : > { %2043 = vmatpush3.xpose.msra.mxu0 %v2486_v40  ;;  %2095 = vmatpush3.xpose.msra.mxu1 %v2401_v9 }
  0xdd   : > { %1970 = vmatprep.mubr.f32.mxu0 %v2428_v18  ;;  %2020 = vmatprep.mubr.f32.mxu1 %v3044_v23 }
  0xde   : > { %2044 = vmatprep.subr.mxu0 %v3045_v24  ;;  %2096 = vmatprep.subr.mxu1 %v2414_v13 }
  0xdf   : > { %1971 = vmatmul.mubr.f32.gmra.mxu0 %v2411_v12  ;;  %2021 = vmatmul.mubr.f32.gmra.mxu1 %v3045_v24 }
  0xe0   : > { %2045 = vmatpush3.xpose.msra.mxu0 %v3045_v24  ;;  %2097 = vmatpush3.xpose.msra.mxu1 %v2414_v13 }
  0xe1   : > { %1973 = vmatprep.mubr.f32.mxu0 %v2408_v11  ;;  %2023 = vmatprep.mubr.f32.mxu1 %v2486_v40 }
  0xe2   : > { %2046 = vmatprep.subr.mxu0 %v3044_v23  ;;  %2098 = vmatprep.subr.mxu1 %v2435_v21 }
  0xe3   : > { %1974 = vmatmul.mubr.f32.gmra.mxu0 %v2405_v10  ;;  %2024 = vmatmul.mubr.f32.gmra.mxu1 %v2464_v32 }
  0xe4   : > { %2047 = vmatpush3.xpose.msra.mxu0 %v3044_v23  ;;  %2099 = vmatpush3.xpose.msra.mxu1 %v2435_v21 }
  0xe5   : > { %2026 = vmatprep.mubr.f32.mxu1 %v2448_v26  ;;  %2048 = vmatprep.subr.mxu0 %v2546_v61 }
  0xe6   : > { %2100 = vmatprep.subr.mxu1 %v2455_v29  ;;  %2064 = vmatprep.mubr.f32.mxu0 %v2470_v35 }
  0xe7   : > { %2027 = vmatmul.mubr.f32.gmra.mxu1 %v2424_v16 }
  0xe8   : > { %2049 = vmatpush3.xpose.msra.mxu0 %v2546_v61  ;;  %2101 = vmatpush3.xpose.msra.mxu1 %v2455_v29 }
  0xe9   : > { %2029 = vmatprep.mubr.f32.mxu1 %v2421_v15  ;;  %2050 = vmatprep.subr.mxu0 %v2563_v3 }
  0xea   : > { %2102 = vmatprep.subr.mxu1 %v2474_v36 }
  0xeb   : > { %2030 = vmatmul.mubr.f32.gmra.mxu1 %v2418_v14 }
  0xec   : > { %2051 = vmatpush3.xpose.msra.mxu0 %v2563_v3  ;;  %2103 = vmatpush3.xpose.msra.mxu1 %v2474_v36 }
  0xed   : > { %2052 = vmatprep.subr.mxu0 %v2580_v25  ;;  %2104 = vmatprep.subr.mxu1 %v2498_v44 }
  0xee   : > { %2120 = vmatprep.mubr.f32.mxu1 %v2470_v35 }
  0xf0   : > { %2053 = vmatpush3.xpose.msra.mxu0 %v2580_v25  ;;  %2105 = vmatpush3.xpose.msra.mxu1 %v2498_v44 }
  0xf1   : > { %2054 = vmatprep.subr.mxu0 %v2595_v41  ;;  %2106 = vmatprep.subr.mxu1 %v2519_v52 }
  0xf4   : > { %2055 = vmatpush3.xpose.msra.mxu0 %v2595_v41  ;;  %2107 = vmatpush3.xpose.msra.mxu1 %v2519_v52 }
  0xf5   : > { %2056 = vmatprep.subr.mxu0 %v2609_v60  ;;  %2108 = vmatprep.subr.mxu1 %v2537_v58 }
  0xf8   : > { %2057 = vmatpush3.xpose.msra.mxu0 %v2609_v60  ;;  %2109 = vmatpush3.xpose.msra.mxu1 %v2537_v58 }
  0xf9   : > { %2058 = vmatprep.subr.mxu0 %v2619_v20  ;;  %2110 = vmatprep.subr.mxu1 %v2554_v0 }
  0xfc   : > { %2059 = vmatpush3.xpose.msra.mxu0 %v2619_v20  ;;  %2111 = vmatpush3.xpose.msra.mxu1 %v2554_v0 }
  0xfd   : > { %2060 = vmatprep.subr.mxu0 %v2629_v56  ;;  %2112 = vmatprep.subr.mxu1 %v2571_v17 }
 0x100   : > { %2061 = vmatpush3.xpose.msra.mxu0 %v2629_v56  ;;  %2113 = vmatpush3.xpose.msra.mxu1 %v2571_v17 }
 0x101   : > { %2062 = vmatprep.subr.mxu0 %v2493_v43  ;;  %2114 = vmatprep.subr.mxu1 %v2588_v31 }
 0x104   : > { %2063 = vmatpush3.xpose.msra.mxu0 %v2493_v43  ;;  %2115 = vmatpush3.xpose.msra.mxu1 %v2588_v31 }
 0x105   : > { %2116 = vmatprep.subr.mxu1 %v2603_v49 }
 0x107   : > { %2065 = vmatmul.mubr.f32.vlgmr.msra.gmra.mxu0 %v2603_v49 }
 0x108   : > { %2117 = vmatpush3.xpose.msra.mxu1 %v2603_v49  ;;  %2067 = vmatprep.mubr.f32.mxu0 %v2588_v31 }
 0x109   : > { %2118 = vmatprep.subr.mxu1 %v2470_v35 }
 0x10b   : > { %2068 = vmatmul.mubr.f32.gmra.mxu0 %v2571_v17 }
 0x10c   : > { %2119 = vmatpush3.xpose.msra.mxu1 %v2470_v35  ;;  %2070 = vmatprep.mubr.f32.mxu0 %v2554_v0 }
 0x10f   : > { %2071 = vmatmul.mubr.f32.gmra.mxu0 %v2537_v58  ;;  %2121 = vmatmul.mubr.f32.vlgmr.msra.gmra.mxu1 %v2603_v49 }
 0x110   : > { %2073 = vmatprep.mubr.f32.mxu0 %v2519_v52  ;;  %2123 = vmatprep.mubr.f32.mxu1 %v2588_v31 }
 0x113   : > { %2074 = vmatmul.mubr.f32.gmra.mxu0 %v2498_v44  ;;  %2124 = vmatmul.mubr.f32.gmra.mxu1 %v2571_v17 }
 0x114   : > { %2076 = vmatprep.mubr.f32.mxu0 %v2474_v36  ;;  %2126 = vmatprep.mubr.f32.mxu1 %v2554_v0 }
 0x117   : > { %2077 = vmatmul.mubr.f32.gmra.mxu0 %v2455_v29  ;;  %2127 = vmatmul.mubr.f32.gmra.mxu1 %v2537_v58 }
 0x118   : > { %2079 = vmatprep.mubr.f32.mxu0 %v2435_v21  ;;  %2129 = vmatprep.mubr.f32.mxu1 %v2519_v52 }
 0x11b   : > { %2080 = vmatmul.mubr.f32.gmra.mxu0 %v2414_v13  ;;  %2130 = vmatmul.mubr.f32.gmra.mxu1 %v2498_v44 }
 0x11c   : > { %2082 = vmatprep.mubr.f32.mxu0 %v2401_v9  ;;  %2132 = vmatprep.mubr.f32.mxu1 %v2474_v36 }
 0x11f   : > { %2083 = vmatmul.mubr.f32.gmra.mxu0 %v2397_v6  ;;  %2133 = vmatmul.mubr.f32.gmra.mxu1 %v2455_v29 }
 0x120   : > { %2085 = vmatprep.mubr.f32.mxu0 %v2395_v5  ;;  %2135 = vmatprep.mubr.f32.mxu1 %v2435_v21 }
 0x123   : > { %2086 = vmatmul.mubr.f32.gmra.mxu0 %v2393_v4  ;;  %2136 = vmatmul.mubr.f32.gmra.mxu1 %v2414_v13 }
 0x124   : > { %2138 = vmatprep.mubr.f32.mxu1 %v2401_v9 }
 0x127   : > { %2139 = vmatmul.mubr.f32.gmra.mxu1 %v2397_v6 }
 0x128   : > { %2141 = vmatprep.mubr.f32.mxu1 %v2395_v5 }
 0x12b   : > { %2142 = vmatmul.mubr.f32.gmra.mxu1 %v2393_v4 }
 0x147   : > { %v2856_v10 = vpop.f32.mrf.mxu0 }
 0x149   : > { %v2858_v11 = vpop.f32.mrf.mxu0 }
 0x14b   : > { %v2860_v12 = vpop.f32.mrf.mxu0 }
 0x14d   : > { %v2862_v15 = vpop.f32.mrf.mxu0 }
 0x14f   : > { %v1898_v14 = vpop.f32.mrf.mxu1  ;;  %v2864_v18 = vpop.f32.mrf.mxu0 }
 0x150   : > { %v569_v24 = vadd.f32 %v1898_v14, %v2856_v10 }
 0x151   : > { %v562_v16 = vpop.f32.mrf.mxu1  ;;  %v2866_v9 = vpop.f32.mrf.mxu0 }
 0x153   : > { %v1901_v13 = vpop.f32.mrf.mxu1  ;;  %v2870_v5 = vpop.f32.mrf.mxu0 }
 0x155   : > { %v2868_v6 = vpop.f32.mrf.mxu1  ;;  %v2874_v21 = vpop.f32.mrf.mxu0 }
 0x157   : > { %v2872_v4 = vpop.f32.mrf.mxu1  ;;  %v2878_v26 = vpop.f32.mrf.mxu0 }
 0x158   : > { %v593_v14 = vadd.f32 %v2872_v4, %v2864_v18 }
 0x159   : > { %v2876_v22 = vpop.f32.mrf.mxu1  ;;  %v2882_v30 = vpop.f32.mrf.mxu0 }
 0x15b   : > { %v2880_v29 = vpop.f32.mrf.mxu1  ;;  %v2886_v34 = vpop.f32.mrf.mxu0 }
 0x15c   : > { %v605_v18 = vadd.f32 %v2880_v29, %v2870_v5 }
 0x15d   : > { %v2884_v32 = vpop.f32.mrf.mxu1  ;;  %v2890_v36 = vpop.f32.mrf.mxu0 }
 0x15f   : > { %v2888_v35 = vpop.f32.mrf.mxu1  ;;  %v2894_v38 = vpop.f32.mrf.mxu0 }
 0x161   : > { %v2892_v37 = vpop.f32.mrf.mxu1  ;;  %v2898_v42 = vpop.f32.mrf.mxu0 }
 0x162   : > { %3046 = vst [vmem:[#allocation9_spill] sm:$0xff] %v2898_v42 }
 0x163   : > { %v2896_v40 = vpop.f32.mrf.mxu1  ;;  %v2902_v44 = vpop.f32.mrf.mxu0 }
 0x164   : > { %3047 = vst [vmem:[#allocation8_spill] sm:$0xff] %v2902_v44 }
 0x165   : > { %v2900_v43 = vpop.f32.mrf.mxu1  ;;  %v2906_v48 = vpop.f32.mrf.mxu0 }
 0x166   : > { %3048 = vst [vmem:[#allocation10_spill] sm:$0xff] %v2906_v48 }
 0x167   : > { %v2904_v46 = vpop.f32.mrf.mxu1 }
 0x169   : > { %v2908_v50 = vpop.f32.mrf.mxu1 }
 0x16a   : > { %3049 = vst [vmem:[#allocation11_spill] sm:$0xff] %v2908_v50 }
 0x16b   : > { %v2910_v52 = vpop.f32.mrf.mxu1 }
 0x16c   : > { %3050 = vst [vmem:[#allocation12_spill] sm:$0xff] %v2910_v52  ;;  %v563_v52 = vadd.f32 %v562_v16, %v2858_v11  ;;  %v159_v11 = vld [vmem:[#allocation5 + $0x8] sm:$0xff] }
 0x16d   : > { %v2912_v55 = vpop.f32.mrf.mxu1 }
 0x16e   : > { %3051 = vst [vmem:[#allocation13_spill] sm:$0xff] %v2912_v55 }
 0x187   : > { %v1954_v51 = vpop.f32.mrf.mxu0 }
 0x188   : > { %v764_v44 = vadd.f32 %v1954_v51, %v569_v24 }
 0x189   : > { %v756_v53 = vpop.f32.mrf.mxu0 }
 0x18b   : > { %v1957_v57 = vpop.f32.mrf.mxu0 }
 0x18d   : > { %v770_v59 = vpop.f32.mrf.mxu0 }
 0x18f   : > { %v2010_v58 = vpop.f32.mrf.mxu1  ;;  %v1960_v63 = vpop.f32.mrf.mxu0 }
 0x191   : > { %v950_v61 = vpop.f32.mrf.mxu1  ;;  %v784_v1 = vpop.f32.mrf.mxu0 }
 0x193   : > { %v2013_v0 = vpop.f32.mrf.mxu1  ;;  %v2914_v8 = vpop.f32.mrf.mxu0 }
 0x195   : > { %v966_v3 = vpop.f32.mrf.mxu1  ;;  %v2916_v19 = vpop.f32.mrf.mxu0 }
 0x197   : > { %v2016_v17 = vpop.f32.mrf.mxu1  ;;  %v2920_v28 = vpop.f32.mrf.mxu0 }
 0x199   : > { %v2918_v25 = vpop.f32.mrf.mxu1  ;;  %v2924_v33 = vpop.f32.mrf.mxu0 }
 0x19b   : > { %v2922_v31 = vpop.f32.mrf.mxu1  ;;  %v2928_v47 = vpop.f32.mrf.mxu0 }
 0x19d   : > { %v2926_v41 = vpop.f32.mrf.mxu1  ;;  %v2932_v54 = vpop.f32.mrf.mxu0 }
 0x19f   : > { %v2930_v49 = vpop.f32.mrf.mxu1  ;;  %v2936_v62 = vpop.f32.mrf.mxu0 }
 0x1a0   : > { %3052 = vst [vmem:[#allocation14_spill] sm:$0xff] %v2936_v62  ;;  %v757_v62 = vadd.f32 %v756_v53, %v563_v52  ;;  %v792_v52 = vadd.f32 %v1960_v63, %v593_v14  ;;  %v806_v63 = vadd.f32 %v2914_v8, %v605_v18 }
 0x1a1   : > { %v2934_v60 = vpop.f32.mrf.mxu1  ;;  %v2940_v20 = vpop.f32.mrf.mxu0 }
 0x1a2   : > { %3053 = vst [vmem:[#allocation15_spill] sm:$0xff] %v2940_v20  ;;  %v951_v42 = vadd.f32 %v950_v61, %v757_v62 }
 0x1a3   : > { %v2938_v2 = vpop.f32.mrf.mxu1  ;;  %v2944_v27 = vpop.f32.mrf.mxu0 }
 0x1a4   : > { %3055 = vst [vmem:[#allocation17_spill] sm:$0xff] %v2944_v27  ;;  %v959_v27 = vadd.f32 %v2010_v58, %v764_v44  ;;  %v587_v44 = vadd.f32 %v2876_v22, %v2866_v9  ;;  %v158_v58 = vld [vmem:[#allocation5] sm:$0xff]  ;;  %v599_v22 = vadd.f32 %v2884_v32, %v2874_v21  ;;  %v1007_v21 = vadd.f32 %v2922_v31, %v806_v63 }
 0x1a5   : > { %v2942_v39 = vpop.f32.mrf.mxu1  ;;  %v2948_v45 = vpop.f32.mrf.mxu0  ;;  %v629_v31 = vadd.f32 %v2896_v40, %v2886_v34  ;;  %v166_v63 = vld [vmem:[#allocation5 + $0x40] sm:$0xff] }
 0x1a6   : > { %3054 = vst [vmem:[#allocation16_spill] sm:$0xff] %v2942_v39  ;;  %3057 = vst [vmem:[#allocation19_spill] sm:$0xff] %v2948_v45  ;;  %v581_v39 = vadd.f32 %v1901_v13, %v2860_v12  ;;  %v575_v45 = vadd.f32 %v2868_v6, %v2862_v15  ;;  %v785_v4 = vadd.f32 %v784_v1, %v587_v44 }
 0x1a7   : > { %v2946_v56 = vpop.f32.mrf.mxu1 }
 0x1a8   : > { %3056 = vst [vmem:[#allocation18_spill] sm:$0xff] %v2946_v56  ;;  %v771_v51 = vadd.f32 %v770_v59, %v575_v45  ;;  %v161_v59 = vld [vmem:[#allocation5 + $0x18] sm:$0xff] }
 0x1a9   : > { %v2950_v7 = vpop.f32.mrf.mxu1 }
 0x1aa   : > { %3058 = vst [vmem:[#allocation20_spill] sm:$0xff] %v2950_v7  ;;  %v778_v7 = vadd.f32 %v1957_v57, %v581_v39  ;;  %v967_v6 = vadd.f32 %v966_v3, %v771_v51  ;;  %v162_v51 = vld [vmem:[#allocation5 + $0x20] sm:$0xff] }
 0x1ab   : > { %v2953_v55 = vpop.f32.mrf.mxu1 }
 0x1ac   : > { %3059 = vst [vmem:[#allocation21_spill] sm:$0xff] %v2953_v55  ;;  %v975_v24 = vadd.f32 %v2013_v0, %v778_v7  ;;  %v983_v7 = vadd.f32 %v2918_v25, %v785_v4 }
 0x1ad   : > { %v2957_v50 = vpop.f32.mrf.mxu1 }
 0x1c7   : > { %v2066_v23 = vpop.f32.mrf.mxu0 }
 0x1c8   : > { %v1196_v10 = vadd.f32 %v2066_v23, %v959_v27 }
 0x1c9   : > { %v1189_v48 = vpop.f32.mrf.mxu0 }
 0x1ca   : > { %v1190_v12 = vadd.f32 %v1189_v48, %v951_v42  ;;  %v991_v42 = vadd.f32 %v2016_v17, %v792_v52  ;;  %v617_v17 = vadd.f32 %v2888_v35, %v2878_v26  ;;  %v165_v52 = vld [vmem:[#allocation5 + $0x38] sm:$0xff] }
 0x1cb   : > { %v2069_v20 = vpop.f32.mrf.mxu0 }
 0x1cc   : > { %v1208_v57 = vadd.f32 %v2069_v20, %v975_v24  ;;  %v160_v20 = vld [vmem:[#allocation5 + $0x10] sm:$0xff]  ;;  %v820_v25 = vadd.f32 %v2920_v28, %v617_v17  ;;  %v169_v17 = vld [vmem:[#allocation5 + $0x58] sm:$0xff] }
 0x1cd   : > { %v1201_v56 = vpop.f32.mrf.mxu0 }
 0x1ce   : > { %v1202_v48 = vadd.f32 %v1201_v56, %v967_v6  ;;  %v799_v56 = vadd.f32 %v2916_v19, %v599_v22 }
 0x1cf   : > { %v2072_v55 = vpop.f32.mrf.mxu0  ;;  %v2122_v16 = vpop.f32.mrf.mxu1 }
 0x1d0   : > { %v1373_v13 = vadd.f32 %v2122_v16, %v1196_v10  ;;  %v1220_v5 = vadd.f32 %v2072_v55, %v991_v42  ;;  %v163_v10 = vld [vmem:[#allocation5 + $0x28] sm:$0xff]  ;;  %v611_v55 = vadd.f32 %v2892_v37, %v2882_v30  ;;  %v999_v26 = vadd.f32 %v2926_v41, %v799_v56 }
 0x1d1   : > { %v1213_v53 = vpop.f32.mrf.mxu0  ;;  %v1366_v15 = vpop.f32.mrf.mxu1  ;;  %v1023_v30 = vadd.f32 %v2930_v49, %v820_v25  ;;  %v623_v41 = vadd.f32 %v2900_v43, %v2890_v36  ;;  %v641_v49 = vadd.f32 %v2904_v46, %v2894_v38  ;;  %v3060_v42 = vld [vmem:[#allocation9_spill] sm:$0xff]  ;;  %v3063_v38 = vld [vmem:[#allocation16_spill] sm:$0xff] }
 0x1d2   : > { %v1461_v61 = vadd.f32 %v1373_v13, %v159_v11  ;;  %v1367_v62 = vadd.f32 %v1366_v15, %v1190_v12  ;;  %v1214_v32 = vadd.f32 %v1213_v53, %v983_v7  ;;  %v813_v13 = vadd.f32 %v2924_v33, %v611_v55  ;;  %v3064_v7 = vld [vmem:[#allocation8_spill] sm:$0xff]  ;;  %v3070_v25 = vld [vmem:[#allocation17_spill] sm:$0xff] }
 0x1d3   : > { %v2075_v39 = vpop.f32.mrf.mxu0  ;;  %v2125_v0 = vpop.f32.mrf.mxu1  ;;  %v834_v15 = vadd.f32 %v2928_v47, %v629_v31  ;;  %v827_v18 = vadd.f32 %v2932_v54, %v623_v41 }
 0x1d4   : > { %1477 = vst [vmem:[#allocation5 + $0x8] sm:$0xff] %v1461_v61  ;;  %v1460_v27 = vadd.f32 %v1367_v62, %v158_v58  ;;  %v1385_v9 = vadd.f32 %v2125_v0, %v1208_v57  ;;  %v1232_v35 = vadd.f32 %v2075_v39, %v1007_v21  ;;  %v164_v57 = vld [vmem:[#allocation5 + $0x30] sm:$0xff]  ;;  %v1015_v34 = vadd.f32 %v2934_v60, %v813_v13  ;;  %v167_v39 = vld [vmem:[#allocation5 + $0x48] sm:$0xff]  ;;  %v3061_v60 = vld [vmem:[#allocation11_spill] sm:$0xff] }
 0x1d5   : > { %v1225_v3 = vpop.f32.mrf.mxu0  ;;  %v1378_v45 = vpop.f32.mrf.mxu1  ;;  %v1039_v36 = vadd.f32 %v2938_v2, %v834_v15  ;;  %v1031_v46 = vadd.f32 %v3063_v38, %v827_v18  ;;  %v3065_v2 = vld [vmem:[#allocation12_spill] sm:$0xff] }
 0x1d6   : > { %1476 = vst [vmem:[#allocation5] sm:$0xff] %v1460_v27  ;;  %v1463_v29 = vadd.f32 %v1385_v9, %v161_v59  ;;  %v1379_v1 = vadd.f32 %v1378_v45, %v1202_v48  ;;  %v1226_v37 = vadd.f32 %v1225_v3, %v999_v26  ;;  %v635_v48 = vadd.f32 %v3061_v60, %v3060_v42  ;;  %v3062_v27 = vld [vmem:[#allocation14_spill] sm:$0xff] }
 0x1d7   : > { %v2078_v23 = vpop.f32.mrf.mxu0  ;;  %v2128_v14 = vpop.f32.mrf.mxu1  ;;  %v848_v9 = vadd.f32 %v3062_v27, %v641_v49  ;;  %v173_v49 = vld [vmem:[#allocation5 + $0x78] sm:$0xff] }
 0x1d8   : > { %1479 = vst [vmem:[#allocation5 + $0x18] sm:$0xff] %v1463_v29  ;;  %v1462_v8 = vadd.f32 %v1379_v1, %v160_v20  ;;  %v1397_v11 = vadd.f32 %v2128_v14, %v1220_v5  ;;  %v1244_v40 = vadd.f32 %v2078_v23, %v1023_v30  ;;  %v653_v5 = vadd.f32 %v3065_v2, %v3064_v7  ;;  %v3066_v29 = vld [vmem:[#allocation15_spill] sm:$0xff]  ;;  %v3067_v23 = vld [vmem:[#allocation18_spill] sm:$0xff] }
 0x1d9   : > { %v1237_v16 = vpop.f32.mrf.mxu0  ;;  %v1390_v24 = vpop.f32.mrf.mxu1  ;;  %v841_v1 = vadd.f32 %v3066_v29, %v635_v48 }
 0x1da   : > { %1478 = vst [vmem:[#allocation5 + $0x10] sm:$0xff] %v1462_v8  ;;  %v1465_v19 = vadd.f32 %v1397_v11, %v163_v10  ;;  %v1391_v12 = vadd.f32 %v1390_v24, %v1214_v32  ;;  %v1238_v43 = vadd.f32 %v1237_v16, %v1015_v34  ;;  %v1055_v10 = vadd.f32 %v3067_v23, %v848_v9  ;;  %v3068_v8 = vld [vmem:[#allocation10_spill] sm:$0xff]  ;;  %v3069_v11 = vld [vmem:[#allocation13_spill] sm:$0xff] }
 0x1db   : > { %v2081_v44 = vpop.f32.mrf.mxu0  ;;  %v2131_v53 = vpop.f32.mrf.mxu1  ;;  %v647_v55 = vadd.f32 %v3069_v11, %v3068_v8  ;;  %v862_v16 = vadd.f32 %v3070_v25, %v653_v5  ;;  %v168_v24 = vld [vmem:[#allocation5 + $0x50] sm:$0xff] }
 0x1dc   : > { %1481 = vst [vmem:[#allocation5 + $0x28] sm:$0xff] %v1465_v19  ;;  %v1464_v28 = vadd.f32 %v1391_v12, %v162_v51  ;;  %v1409_v58 = vadd.f32 %v2131_v53, %v1232_v35  ;;  %v1256_v54 = vadd.f32 %v2081_v44, %v1039_v36  ;;  %v3071_v35 = vld [vmem:[#allocation20_spill] sm:$0xff]  ;;  %v3072_v44 = vld [vmem:[#allocation19_spill] sm:$0xff]  ;;  %v171_v53 = vld [vmem:[#allocation5 + $0x68] sm:$0xff] }
 0x1dd   : > { %v1249_v6 = vpop.f32.mrf.mxu0  ;;  %v1402_v61 = vpop.f32.mrf.mxu1  ;;  %v1047_v19 = vadd.f32 %v3071_v35, %v841_v1  ;;  %v172_v36 = vld [vmem:[#allocation5 + $0x70] sm:$0xff] }
 0x1de   : > { %1480 = vst [vmem:[#allocation5 + $0x20] sm:$0xff] %v1464_v28  ;;  %v1467_v33 = vadd.f32 %v1409_v58, %v165_v52  ;;  %v1403_v62 = vadd.f32 %v1402_v61, %v1226_v37  ;;  %v1250_v14 = vadd.f32 %v1249_v6, %v1031_v46  ;;  %v855_v52 = vadd.f32 %v3072_v44, %v647_v55  ;;  %v3073_v37 = vld [vmem:[#allocation21_spill] sm:$0xff] }
 0x1df   : > { %v2084_v4 = vpop.f32.mrf.mxu0  ;;  %v2134_v59 = vpop.f32.mrf.mxu1  ;;  %v1071_v28 = vadd.f32 %v3073_v37, %v862_v16 }
 0x1e0   : > { %1483 = vst [vmem:[#allocation5 + $0x38] sm:$0xff] %v1467_v33  ;;  %v1466_v47 = vadd.f32 %v1403_v62, %v164_v57  ;;  %v1421_v0 = vadd.f32 %v2134_v59, %v1244_v40  ;;  %v1268_v12 = vadd.f32 %v2084_v4, %v1055_v10  ;;  %v170_v57 = vld [vmem:[#allocation5 + $0x60] sm:$0xff]  ;;  %v1063_v34 = vadd.f32 %v2957_v50, %v855_v52 }
 0x1e1   : > { %v1261_v22 = vpop.f32.mrf.mxu0  ;;  %v1414_v3 = vpop.f32.mrf.mxu1 }
 0x1e2   : > { %1482 = vst [vmem:[#allocation5 + $0x30] sm:$0xff] %v1466_v47  ;;  %v1469_v20 = vadd.f32 %v1421_v0, %v167_v39  ;;  %v1415_v45 = vadd.f32 %v1414_v3, %v1238_v43  ;;  %v1262_v58 = vadd.f32 %v1261_v22, %v1047_v19 }
 0x1e3   : > { %v2137_v56 = vpop.f32.mrf.mxu1  ;;  %v2087_v51 = vpop.f32.mrf.mxu0 }
 0x1e4   : > { %1485 = vst [vmem:[#allocation5 + $0x48] sm:$0xff] %v1469_v20  ;;  %v1468_v21 = vadd.f32 %v1415_v45, %v166_v63  ;;  %v1433_v32 = vadd.f32 %v2137_v56, %v1256_v54  ;;  %v1280_v40 = vadd.f32 %v2087_v51, %v1071_v28 }
 0x1e5   : > { %v1426_v26 = vpop.f32.mrf.mxu1  ;;  %v1273_v6 = vpop.f32.mrf.mxu0 }
 0x1e6   : > { %1484 = vst [vmem:[#allocation5 + $0x40] sm:$0xff] %v1468_v21  ;;  %v1471_v31 = vadd.f32 %v1433_v32, %v169_v17  ;;  %v1427_v13 = vadd.f32 %v1426_v26, %v1250_v14  ;;  %v1274_v4 = vadd.f32 %v1273_v6, %v1063_v34 }
 0x1e7   : > { %v2140_v30 = vpop.f32.mrf.mxu1 }
 0x1e8   : > { %1487 = vst [vmem:[#allocation5 + $0x58] sm:$0xff] %v1471_v31  ;;  %v1470_v41 = vadd.f32 %v1427_v13, %v168_v24  ;;  %v1445_v15 = vadd.f32 %v2140_v30, %v1268_v12 }
 0x1e9   : > { %v1438_v61 = vpop.f32.mrf.mxu1 }
 0x1ea   : > { %1486 = vst [vmem:[#allocation5 + $0x50] sm:$0xff] %v1470_v41  ;;  %v1473_v33 = vadd.f32 %v1445_v15, %v171_v53  ;;  %v1439_v62 = vadd.f32 %v1438_v61, %v1262_v58 }
 0x1eb   : > { %v2143_v18 = vpop.f32.mrf.mxu1 }
 0x1ec   : > { %1489 = vst [vmem:[#allocation5 + $0x68] sm:$0xff] %v1473_v33  ;;  %v1472_v39 = vadd.f32 %v1439_v62, %v170_v57  ;;  %v1457_v59 = vadd.f32 %v2143_v18, %v1280_v40 }
 0x1ed   : > { %v1450_v43 = vpop.f32.mrf.mxu1 }
 0x1ee   : > { %1488 = vst [vmem:[#allocation5 + $0x60] sm:$0xff] %v1472_v39  ;;  %v1475_v47 = vadd.f32 %v1457_v59, %v173_v49  ;;  %v1451_v0 = vadd.f32 %v1450_v43, %v1274_v4  ;;  %1495 = sbr.rel (%p1611_p8) target bundleno = 510 (0x1fe), region = 36 }
 0x1f0   : > { %1491 = vst [vmem:[#allocation5 + $0x78] sm:$0xff] %v1475_v47  ;;  %v1474_v42 = vadd.f32 %v1451_v0, %v172_v36 }
 0x1f2   : > { %1490 = vst [vmem:[#allocation5 + $0x70] sm:$0xff] %v1474_v42 }
 0x1f3   : > { %v1496_v50 = vld [vmem:[#allocation5] sm:$0xff]  ;;  %v1497_v60 = vld [vmem:[#allocation5 + $0x8] sm:$0xff]  ;;  %v1498_v48 = vld [vmem:[#allocation5 + $0x10] sm:$0xff] }
 0x1f4   : > { %v1512_v27 = vmul.f32 0.00048828125, %v1496_v50  ;;  %v1513_v9 = vmul.f32 0.00048828125, %v1497_v60  ;;  %v1514_v22 = vmul.f32 0.00048828125, %v1498_v48  ;;  %v1499_v63 = vld [vmem:[#allocation5 + $0x18] sm:$0xff]  ;;  %v1500_v3 = vld [vmem:[#allocation5 + $0x20] sm:$0xff]  ;;  %v1501_v38 = vld [vmem:[#allocation5 + $0x28] sm:$0xff] }
 0x1f5   : > { %v1515_v46 = vmul.f32 0.00048828125, %v1499_v63  ;;  %v1516_v54 = vmul.f32 0.00048828125, %v1500_v3  ;;  %v1517_v20 = vmul.f32 0.00048828125, %v1501_v38  ;;  %v1502_v45 = vld [vmem:[#allocation5 + $0x30] sm:$0xff]  ;;  %v1503_v7 = vld [vmem:[#allocation5 + $0x38] sm:$0xff]  ;;  %v1504_v2 = vld [vmem:[#allocation5 + $0x40] sm:$0xff] }
 0x1f6   : > { %1528 = vst [vmem:[#allocation5] sm:$0xff] %v1512_v27  ;;  %1529 = vst [vmem:[#allocation5 + $0x8] sm:$0xff] %v1513_v9  ;;  %v1518_v5 = vmul.f32 0.00048828125, %v1502_v45  ;;  %v1519_v29 = vmul.f32 0.00048828125, %v1503_v7  ;;  %v1520_v1 = vmul.f32 0.00048828125, %v1504_v2  ;;  %v1505_v17 = vld [vmem:[#allocation5 + $0x48] sm:$0xff] }
 0x1f7   : > { %1530 = vst [vmem:[#allocation5 + $0x10] sm:$0xff] %v1514_v22  ;;  %v1506_v56 = vld [vmem:[#allocation5 + $0x50] sm:$0xff]  ;;  %v1507_v23 = vld [vmem:[#allocation5 + $0x58] sm:$0xff]  ;;  %1531 = vst [vmem:[#allocation5 + $0x18] sm:$0xff] %v1515_v46  ;;  %v1521_v10 = vmul.f32 0.00048828125, %v1505_v17 }
 0x1f8   : > { %1532 = vst [vmem:[#allocation5 + $0x20] sm:$0xff] %v1516_v54  ;;  %1533 = vst [vmem:[#allocation5 + $0x28] sm:$0xff] %v1517_v20  ;;  %v1522_v14 = vmul.f32 0.00048828125, %v1506_v56  ;;  %v1523_v21 = vmul.f32 0.00048828125, %v1507_v23  ;;  %v1508_v32 = vld [vmem:[#allocation5 + $0x60] sm:$0xff]  ;;  %v1509_v8 = vld [vmem:[#allocation5 + $0x68] sm:$0xff] }
 0x1f9   : > { %v1510_v11 = vld [vmem:[#allocation5 + $0x70] sm:$0xff]  ;;  %1534 = vst [vmem:[#allocation5 + $0x30] sm:$0xff] %v1518_v5  ;;  %1535 = vst [vmem:[#allocation5 + $0x38] sm:$0xff] %v1519_v29  ;;  %v1524_v55 = vmul.f32 0.00048828125, %v1508_v32  ;;  %v1525_v25 = vmul.f32 0.00048828125, %v1509_v8  ;;  %v1511_v51 = vld [vmem:[#allocation5 + $0x78] sm:$0xff] }
 0x1fa   : > { %1536 = vst [vmem:[#allocation5 + $0x40] sm:$0xff] %v1520_v1  ;;  %v1526_v16 = vmul.f32 0.00048828125, %v1510_v11  ;;  %1537 = vst [vmem:[#allocation5 + $0x48] sm:$0xff] %v1521_v10  ;;  %v1527_v24 = vmul.f32 0.00048828125, %v1511_v51 }
 0x1fb   : > { %1538 = vst [vmem:[#allocation5 + $0x50] sm:$0xff] %v1522_v14  ;;  %1539 = vst [vmem:[#allocation5 + $0x58] sm:$0xff] %v1523_v21 }
 0x1fc   : > { %1540 = vst [vmem:[#allocation5 + $0x60] sm:$0xff] %v1524_v55  ;;  %1541 = vst [vmem:[#allocation5 + $0x68] sm:$0xff] %v1525_v25 }
 0x1fd   : > { %1542 = vst [vmem:[#allocation5 + $0x70] sm:$0xff] %v1526_v16  ;;  %1543 = vst [vmem:[#allocation5 + $0x78] sm:$0xff] %v1527_v24 }
 0x1fe PF: > { %p2155_p1 = scmp.eq.s32.totalorder %s2325_s10, 1  ;;  %s2293_s9 = smov [#allocation5]  }
 0x1ff   : > { %s1550_s15 = sshll.u32 %s2293_s9, 4  ;;  %s1551_s15 = int_to_ptr.vmem [resolvable:$true] %s1550_s15 }
 0x200   : > { %s2224_s21 = scalar_lea.vmem %s1551_s15, 2048  ;;  %p2231_p5 = scmp.lt.s32.totalorder %s1551_s15, %s1551_s15 }
 0x201   : > { %p2225_p2 = scmp.ne.s32.totalorder %s1551_s15, %s2224_s21  ;;  %p2232_p6 = scmp.lt.s32.totalorder %s2224_s21, %s2224_s21 }
 0x203   : > { %p2226_p3 = pnand %p2225_p2, %p2155_p1  ;;  %p2233_p9 = por %p2232_p6, %p2231_p5 }
 0x205   : > { %p2227_p4 = pneg %p2226_p3 }
 0x207   : > { %p2234_p11 = pnand %p2233_p9, %p2227_p4 }
 0x209   : > { %2237 = shalt.err (!%p2234_p11)
}
 0x20a   : > { %s2294_s22 = smov 128   ;;  %s2295_s23 = smov 8  }
 0x20b   : > { %2147 = dma.vmem_to_hbm [thread:$0]  (%p2155_p1), %s1551_s15, 2048, %s3033_s1, [#allocation4], %s2294_s22, %s2294_s22, %s2295_s23  }
 0x20c   : > { %2269 = dma.done.wait (%p2155_p1), [#allocation4], 2048  }
 0x20d   : > { %2271 = vsyncadd (%p2155_p1), [#allocation4], 4294965248 }
 0x20e PF: > { %p12_p10 = scmp.ge.s32.totalorder %s2328_s11, 4   ;;  %s3074_s6 = smov %s2278_s7 }
 0x20f   : > { %s3075_s7 = smov %s2282_s8  ;;  %s3076_s8 = smov %s2338_s14 }
 0x210   : > { %s3077_s9 = smov %s2328_s11  ;;  %14 = sbr.rel (!%p12_p10) target bundleno = 4 (0x4), region = 69 }
 0x215   :  { %1566 = vsyncpa [#allocation3], 1 }
 0x216   :  { %1568 = vsyncpa [#allocation3 + $0x1], 1 }
 0x217   :  { %1569 = vsyncpa [#allocation4], 1 }
 0x218   :  { %1571 = vsyncpa [#allocation4 + $0x1], 1 }

</bundles_post_ra>
